<compile_context>
chip_gen: v5e
topology: v5e:2x2
jax: 0.10.0
libtpu: 0.0.40
codegen_flags: <defaults>
</compile_context>

<pallas_src>
import functools
import math

import jax
import jax.numpy as jnp
from jax import lax
from jax.experimental import pallas as pl
from jax.experimental.pallas import tpu as pltpu

_MIB = 1024 * 1024


def _round_up(n, k):
    return -(-n // k) * k


def _device_defaults():
    """(default batch tile, default VMEM budget bytes) for the local TPU."""
    block_b, budget = 256, 48 * _MIB            # v7x-safe (64 MiB VMEM) fallback
    try:
        kind = jax.devices()[0].device_kind.lower()
        if "v5 lite" in kind or "v5e" in kind or "v5litepod" in kind:
            block_b = 128                        # 4x128^2 MXU: M=128 already full
        if "v5" in kind or "v6" in kind:
            budget = 80 * _MIB                   # 128 MiB VMEM parts
    except Exception:
        pass
    return block_b, budget


def _arc_margin_kernel(x_ref, w_ref, label_ref, o_ref, wn_ref, *,
                       s, cos_m, sin_m, th, mm, easy_margin, ls_eps,
                       out_features, block_b, block_c, row_align):
    ci = pl.program_id(0)   # class-tile index (outer; weight stream; "parallel")
    bi = pl.program_id(1)   # batch-tile index (inner; "arbitrary")

    # Normalize this weight tile once per class tile (f32 math, rsqrt -> EUP),
    # store it in matmul-dtype scratch; reused for every inner batch tile.
    @pl.when(bi == 0)
    def _():
        w = w_ref[...].astype(jnp.float32)
        inv_w = lax.rsqrt(
            jnp.maximum(jnp.sum(w * w, axis=-1, keepdims=True), 1e-24))
        wn_ref[...] = (w * inv_w).astype(wn_ref.dtype)

    # Current batch tile of the (already wrapper-normalized) x.  When x is
    # VMEM-resident (full batch block, fetched once) slice it; when streamed
    # per batch tile the ref already *is* the tile.
    if x_ref.shape[0] == block_b:
        x_n = x_ref[...]
    else:
        row0 = pl.multiple_of(bi * block_b, row_align)
        x_n = x_ref[pl.ds(row0, block_b), :]

    # cosine = x_n @ w_n.T : contract feature (last) axis of both operands on
    # the MXU, accumulate in f32.
    cosine = lax.dot_general(
        x_n, wn_ref[...],
        dimension_numbers=(((1,), (1,)), ((), ())),
        preferred_element_type=jnp.float32)                      # (TB, TC) f32

    # One-hot: fold the class-tile offset into the (TB, 1) label side.
    labels_local = label_ref[...] - ci * block_c                 # (TB, 1) i32
    cols = lax.broadcasted_iota(jnp.int32, cosine.shape, 1)
    is_target = cols == labels_local                             # (TB, TC)

    if ls_eps > 0.0:
        # Label smoothing needs phi everywhere: full-tile margin math.
        sine = jnp.sqrt(jnp.maximum(1.0 - cosine * cosine, 0.0))
        phi = cosine * cos_m - sine * sin_m
        if easy_margin:
            phi = jnp.where(cosine > 0.0, phi, cosine)
        else:
            phi = jnp.where(cosine > th, phi, cosine - mm)
        one_hot = (1.0 - ls_eps) * is_target.astype(jnp.float32) \
            + ls_eps / out_features
        out = (cosine + one_hot * (phi - cosine)) * s
    else:
        # Fast path: only the target column per row gets the margin.  Gather
        # its cosine with a masked row reduction (XLU), do the sqrt/margin
        # math on a (TB, 1) vector, and blend with a single select.
        t_cos = jnp.sum(jnp.where(is_target, cosine, 0.0),
                        axis=-1, keepdims=True)                  # (TB, 1)
        t_sin = jnp.sqrt(jnp.maximum(1.0 - t_cos * t_cos, 0.0))
        t_phi = t_cos * cos_m - t_sin * sin_m
        if easy_margin:
            t_phi = jnp.where(t_cos > 0.0, t_phi, t_cos)
        else:
            t_phi = jnp.where(t_cos > th, t_phi, t_cos - mm)
        out = jnp.where(is_target, t_phi, cosine) * s
    o_ref[...] = out.astype(o_ref.dtype)


def arc_margin_product(x, weight, label, *, s=30.0, m=0.5, easy_margin=False,
                       ls_eps=0.0, matmul_dtype=jnp.bfloat16,
                       block_b=None, block_c=2048, vmem_budget_bytes=None):
    """x: (B, in_features), weight: (out_features, in_features), label: (B,)
       ->  (B, out_features) float32."""
    B, D = x.shape
    C, D2 = weight.shape
    assert D == D2, "feature dims must match"

    dflt_tb, dflt_budget = _device_defaults()
    if block_b is None:
        block_b = dflt_tb
    if vmem_budget_bytes is None:
        vmem_budget_bytes = dflt_budget

    m_dtype = jnp.dtype(matmul_dtype)
    m_bytes = m_dtype.itemsize

    # ---- Tile geometry: lane-dense feature dim, balanced batch/class tiles.
    Dp = _round_up(D, 128)
    nb = -(-B // block_b)
    TB = _round_up(-(-B // nb), 8)
    nb = -(-B // TB)                  # no fully out-of-bounds batch blocks
    Bp = TB * nb                      # x / labels padded batch dim (cheap)

    # Keep x VMEM-resident (fetched once) unless it would eat the budget.
    x_resident = 6 * Bp * Dp * m_bytes <= vmem_budget_bytes

    def _footprint(tc):
        x_buf = (Bp if x_resident else TB) * Dp * m_bytes * 2
        return (2 * tc * Dp * m_bytes          # double-buffered weight stream
                + tc * Dp * m_bytes            # normalized-weight scratch
                + x_buf                        # resident / streamed x
                + 2 * TB * tc * 4              # double-buffered f32 out tile
                + 2 * TB * 4)                  # labels

    nc = -(-C // block_c)
    TC = _round_up(-(-C // nc), 128)
    while _footprint(TC) > vmem_budget_bytes and TC > 128:
        nc += 1
        TC = _round_up(-(-C // nc), 128)
    nc = -(-C // TC)                  # no fully out-of-bounds class blocks

    # ---- Wrapper-side prep: only the cheap B*D / B streams are padded; the
    # dominant C*D weight stream and the B*C output keep their natural shapes.
    xf = x.astype(jnp.float32)
    inv_x = lax.rsqrt(
        jnp.maximum(jnp.sum(xf * xf, axis=-1, keepdims=True), 1e-24))
    x_n = (xf * inv_x).astype(m_dtype)
    if (Bp, Dp) != (B, D):
        x_n = jnp.pad(x_n, ((0, Bp - B), (0, Dp - D)))

    w_s = weight if weight.dtype == m_dtype else weight.astype(m_dtype)
    if Dp != D:
        w_s = jnp.pad(w_s, ((0, 0), (0, Dp - D)))

    label_p = label.astype(jnp.int32).reshape(B, 1)
    if Bp != B:
        label_p = jnp.pad(label_p, ((0, Bp - B), (0, 0)))

    kernel = functools.partial(
        _arc_margin_kernel,
        s=float(s), cos_m=math.cos(m), sin_m=math.sin(m),
        th=math.cos(math.pi - m), mm=math.sin(math.pi - m) * m,
        easy_margin=bool(easy_margin), ls_eps=float(ls_eps),
        out_features=C, block_b=TB, block_c=TC, row_align=TB & -TB)

    if x_resident:
        x_spec = pl.BlockSpec((Bp, Dp), lambda ci, bi: (0, 0))    # fetched once
    else:
        x_spec = pl.BlockSpec((TB, Dp), lambda ci, bi: (bi, 0))

    x_stream_bytes = Bp * Dp * m_bytes * (1 if x_resident else nc)
    vmem_limit = int(min(_footprint(TC) + 16 * _MIB, 112 * _MIB))

    out = pl.pallas_call(
        kernel,
        out_shape=jax.ShapeDtypeStruct((B, C), jnp.float32),
        grid_spec=pltpu.PrefetchScalarGridSpec(
            num_scalar_prefetch=0,
            grid=(nc, nb),   # class tiles: outer/"parallel"; batch: inner
            in_specs=[
                x_spec,                                           # normalized x
                pl.BlockSpec((TC, Dp), lambda ci, bi: (ci, 0)),   # weight tile
                pl.BlockSpec((TB, 1), lambda ci, bi: (bi, 0)),    # labels
            ],
            out_specs=pl.BlockSpec((TB, TC), lambda ci, bi: (bi, ci)),
            scratch_shapes=[pltpu.VMEM((TC, Dp), m_dtype)],       # normalized W
        ),
        compiler_params=pltpu.CompilerParams(
            dimension_semantics=("parallel", "arbitrary"),
            vmem_limit_bytes=vmem_limit),
        cost_estimate=pl.CostEstimate(
            flops=2 * B * C * Dp,
            transcendentals=int((B * C if ls_eps > 0.0 else B * nc) + C),
            bytes_accessed=int(x_stream_bytes + C * Dp * m_bytes
                               + B * C * 4 + Bp * 4 * nc)),
    )(x_n, w_s, label_p)
    return out


def _reference(x, weight, label, *, s=30.0, m=0.5, easy_margin=False,
               ls_eps=0.0, matmul_dtype=jnp.float32):
    xn = x / jnp.maximum(jnp.linalg.norm(x, axis=-1, keepdims=True), 1e-12)
    wn = weight / jnp.maximum(jnp.linalg.norm(weight, axis=-1, keepdims=True),
                              1e-12)
    cosine = jnp.dot(xn.astype(matmul_dtype), wn.astype(matmul_dtype).T,
                     preferred_element_type=jnp.float32)
    sine = jnp.sqrt(jnp.maximum(1.0 - cosine ** 2, 0.0))
    phi = cosine * math.cos(m) - sine * math.sin(m)
    if easy_margin:
        phi = jnp.where(cosine > 0, phi, cosine)
    else:
        phi = jnp.where(cosine > math.cos(math.pi - m),
                        phi, cosine - math.sin(math.pi - m) * m)
    one_hot = jax.nn.one_hot(label, weight.shape[0], dtype=jnp.float32)
    if ls_eps > 0:
        one_hot = (1 - ls_eps) * one_hot + ls_eps / weight.shape[0]
    return (one_hot * phi + (1.0 - one_hot) * cosine) * s


if __name__ == "__main__":
    # Small shapes consistent with the module: batch=8, in_features=64, classes=128.
    B, IN_FEATURES, OUT_FEATURES = 8, 64, 128

    key = jax.random.PRNGKey(0)
    kx, kw, kl = jax.random.split(key, 3)

    x = jax.random.normal(kx, (B, IN_FEATURES), dtype=jnp.float32)
    limit = math.sqrt(6.0 / (IN_FEATURES + OUT_FEATURES))   # xavier_uniform_
    weight = jax.random.uniform(kw, (OUT_FEATURES, IN_FEATURES),
                                dtype=jnp.float32, minval=-limit, maxval=limit)
    label = jax.random.randint(kl, (B,), 0, OUT_FEATURES, dtype=jnp.int32)

    # 1) Strict numerical check: f32 streams/operands, ls_eps=0 fast epilogue.
    out_f32 = jax.block_until_ready(
        arc_margin_product(x, weight, label, s=30.0, m=0.5, easy_margin=False,
                           ls_eps=0.0, matmul_dtype=jnp.float32))
    ref_f32 = _reference(x, weight, label, s=30.0, m=0.5, easy_margin=False,
                         ls_eps=0.0, matmul_dtype=jnp.float32)
    assert out_f32.shape == (B, OUT_FEATURES)
    assert jnp.allclose(out_f32, ref_f32, atol=1e-4, rtol=1e-4)

    # 2) Default fast path: bf16 weight/activation streams (f32 accumulation)
    #    with label smoothing, vs. a reference that also sees bf16 weights.
    w_q = weight.astype(jnp.bfloat16).astype(jnp.float32)
    out_bf16 = jax.block_until_ready(
        arc_margin_product(x, weight, label, s=30.0, m=0.5, easy_margin=False,
                           ls_eps=0.3))
    ref_bf16 = _reference(x, w_q, label, s=30.0, m=0.5, easy_margin=False,
                          ls_eps=0.3, matmul_dtype=jnp.bfloat16)
    assert jnp.allclose(out_bf16, ref_bf16, atol=1e-2, rtol=1e-2)

    # 3) Ragged / unpadded-stream check: B, D, C not multiples of the tile
    #    sizes, multiple class tiles, resident-x slicing path, easy_margin.
    B2, D2, C2 = 12, 96, 200
    k2x, k2w, k2l = jax.random.split(jax.random.PRNGKey(1), 3)
    x2 = jax.random.normal(k2x, (B2, D2), dtype=jnp.float32)
    w2 = jax.random.normal(k2w, (C2, D2), dtype=jnp.float32) * 0.05
    l2 = jax.random.randint(k2l, (B2,), 0, C2, dtype=jnp.int32)
    out2 = jax.block_until_ready(
        arc_margin_product(x2, w2, l2, s=30.0, m=0.5, easy_margin=True,
                           ls_eps=0.0, matmul_dtype=jnp.float32,
                           block_b=8, block_c=128))
    ref2 = _reference(x2, w2, l2, s=30.0, m=0.5, easy_margin=True,
                      ls_eps=0.0, matmul_dtype=jnp.float32)
    assert out2.shape == (B2, C2)
    assert jnp.allclose(out2, ref2, atol=1e-4, rtol=1e-4)

    print("KERNEL_OK")
</pallas_src>

<mosaic_0001>
module attributes {stable_mosaic.version = 11 : i64} {
  func.func @_arc_margin_kernel(%arg0: i32, %arg1: i32, %arg2: memref<8x128xf32, #tpu.memory_space<vmem>>, %arg3: memref<128x128xf32, #tpu.memory_space<vmem>>, %arg4: memref<8x1xi32, #tpu.memory_space<vmem>>, %arg5: memref<8x128xf32, #tpu.memory_space<vmem>>, %arg6: memref<128x128xf32, #tpu.memory_space<vmem>>) attributes {dimension_semantics = [#tpu.dimension_semantics<parallel>, #tpu.dimension_semantics<arbitrary>], iteration_bounds = array<i64: 1, 1>, scalar_prefetch = 0 : i64, scratch_operands = 1 : i64, tpu.core_type = #tpu.core_type<tc>, window_params = [{pipeline_mode = #tpu.pipeline_mode<synchronous>, transform_indices = @transform_0, window_bounds = array<i64: 8, 128>}, {transform_indices = @transform_1, window_bounds = array<i64: 128, 128>}, {transform_indices = @transform_2, window_bounds = array<i64: 8, 1>}, {transform_indices = @transform_3, window_bounds = array<i64: 8, 128>}]} {
    %c0_i32 = arith.constant 0 : i32
    %0 = arith.cmpi eq, %arg1, %c0_i32 : i32
    %1 = arith.extui %0 : i1 to i32
    %c0_i32_0 = arith.constant 0 : i32
    %2 = arith.cmpi ne, %1, %c0_i32_0 : i32
    scf.if %2 {
      %c0_17 = arith.constant 0 : index
      %c0_18 = arith.constant 0 : index
      %39 = vector.load %arg3[%c0_17, %c0_18] : memref<128x128xf32, #tpu.memory_space<vmem>>, vector<128x128xf32>
      %40 = arith.mulf %39, %39 : vector<128x128xf32>
      %cst_19 = arith.constant dense<0.000000e+00> : vector<128xf32>
      %41 = vector.multi_reduction <add>, %40, %cst_19 [1] : vector<128x128xf32> to vector<128xf32>
      %42 = vector.shape_cast %41 : vector<128xf32> to vector<128x1xf32>
      %cst_20 = arith.constant 1.000000e-24 : f32
      %43 = vector.broadcast %cst_20 : f32 to vector<128x1xf32>
      %44 = arith.maximumf %42, %43 : vector<128x1xf32>
      %45 = math.rsqrt %44 : vector<128x1xf32>
      %46 = vector.broadcast %45 : vector<128x1xf32> to vector<128x128xf32>
      %47 = arith.mulf %39, %46 : vector<128x128xf32>
      %c0_21 = arith.constant 0 : index
      %c0_22 = arith.constant 0 : index
      %48 = vector.load %arg6[%c0_21, %c0_22] : memref<128x128xf32, #tpu.memory_space<vmem>>, vector<128x128xf32>
      tpu.vector_store %arg6[%c0_21, %c0_22], %47 {strides = array<i32>} : memref<128x128xf32, #tpu.memory_space<vmem>>, vector<128x128xf32>,
    } else {
    }
    %c0 = arith.constant 0 : index
    %c0_1 = arith.constant 0 : index
    %3 = vector.load %arg2[%c0, %c0_1] : memref<8x128xf32, #tpu.memory_space<vmem>>, vector<8x128xf32>
    %c0_2 = arith.constant 0 : index
    %c0_3 = arith.constant 0 : index
    %4 = vector.load %arg6[%c0_2, %c0_3] : memref<128x128xf32, #tpu.memory_space<vmem>>, vector<128x128xf32>
    %cst = arith.constant dense<0.000000e+00> : vector<8x128xf32>
    %5 = tpu.matmul %3, %4, %cst {dimension_numbers = #tpu.dot_dimension_numbers<[1], [1], [0], [0], [0, 0, 1, 0], [], []>} : vector<8x128xf32>, vector<128x128xf32>, vector<8x128xf32> -> vector<8x128xf32>
    %c0_4 = arith.constant 0 : index
    %c0_5 = arith.constant 0 : index
    %6 = vector.load %arg4[%c0_4, %c0_5] : memref<8x1xi32, #tpu.memory_space<vmem>>, vector<8x1xi32>
    %c128_i32 = arith.constant 128 : i32
    %7 = arith.muli %arg0, %c128_i32 : i32
    %8 = vector.broadcast %7 : i32 to vector<8x1xi32>
    %9 = arith.subi %6, %8 : vector<8x1xi32>
    %10 = tpu.iota {dimensions = array<i32: 1>} : vector<8x128xi32>
    %11 = vector.broadcast %9 : vector<8x1xi32> to vector<8x128xi32>
    %12 = arith.cmpi eq, %10, %11 : vector<8x128xi32>
    %cst_6 = arith.constant 0.000000e+00 : f32
    %13 = vector.broadcast %cst_6 : f32 to vector<8x128xf32>
    %14 = arith.select %12, %5, %13 : vector<8x128xi1>, vector<8x128xf32>
    %cst_7 = arith.constant dense<0.000000e+00> : vector<8xf32>
    %15 = vector.multi_reduction <add>, %14, %cst_7 [1] : vector<8x128xf32> to vector<8xf32>
    %16 = vector.shape_cast %15 : vector<8xf32> to vector<8x1xf32>
    %17 = arith.mulf %16, %16 : vector<8x1xf32>
    %cst_8 = arith.constant 1.000000e+00 : f32
    %18 = vector.broadcast %cst_8 : f32 to vector<8x1xf32>
    %19 = arith.subf %18, %17 : vector<8x1xf32>
    %cst_9 = arith.constant 0.000000e+00 : f32
    %20 = vector.broadcast %cst_9 : f32 to vector<8x1xf32>
    %21 = arith.maximumf %19, %20 : vector<8x1xf32>
    %22 = math.sqrt %21 : vector<8x1xf32>
    %cst_10 = arith.constant 0.87758255 : f32
    %23 = vector.broadcast %cst_10 : f32 to vector<8x1xf32>
    %24 = arith.mulf %16, %23 : vector<8x1xf32>
    %cst_11 = arith.constant 0.47942555 : f32
    %25 = vector.broadcast %cst_11 : f32 to vector<8x1xf32>
    %26 = arith.mulf %22, %25 : vector<8x1xf32>
    %27 = arith.subf %24, %26 : vector<8x1xf32>
    %cst_12 = arith.constant -0.87758255 : f32
    %28 = vector.broadcast %cst_12 : f32 to vector<8x1xf32>
    %29 = arith.cmpf ogt, %16, %28 : vector<8x1xf32>
    %cst_13 = arith.constant 0.239712775 : f32
    %30 = vector.broadcast %cst_13 : f32 to vector<8x1xf32>
    %31 = arith.subf %16, %30 : vector<8x1xf32>
    %32 = arith.select %29, %27, %31 : vector<8x1xi1>, vector<8x1xf32>
    %33 = vector.shape_cast %32 : vector<8x1xf32> to vector<8x1xf32>
    %34 = vector.broadcast %33 : vector<8x1xf32> to vector<8x128xf32>
    %35 = arith.select %12, %34, %5 : vector<8x128xi1>, vector<8x128xf32>
    %cst_14 = arith.constant 3.000000e+01 : f32
    %36 = vector.broadcast %cst_14 : f32 to vector<8x128xf32>
    %37 = arith.mulf %35, %36 : vector<8x128xf32>
    %c0_15 = arith.constant 0 : index
    %c0_16 = arith.constant 0 : index
    %38 = vector.load %arg5[%c0_15, %c0_16] : memref<8x128xf32, #tpu.memory_space<vmem>>, vector<8x128xf32>
    tpu.vector_store %arg5[%c0_15, %c0_16], %37 {strides = array<i32>} : memref<8x128xf32, #tpu.memory_space<vmem>>, vector<8x128xf32>,
    return
  }
  func.func @transform_0(%arg0: i32, %arg1: i32) -> (i32, i32) {
    %c0_i32 = arith.constant 0 : i32
    %c0_i32_0 = arith.constant 0 : i32
    %c0_i32_1 = arith.constant 0 : i32
    return %c0_i32, %c0_i32_0 : i32, i32
  }
  func.func @transform_1(%arg0: i32, %arg1: i32) -> (i32, i32) {
    %c0_i32 = arith.constant 0 : i32
    %c0_i32_0 = arith.constant 0 : i32
    return %arg0, %c0_i32 : i32, i32
  }
  func.func @transform_2(%arg0: i32, %arg1: i32) -> (i32, i32) {
    %c0_i32 = arith.constant 0 : i32
    %c0_i32_0 = arith.constant 0 : i32
    return %arg1, %c0_i32 : i32, i32
  }
  func.func @transform_3(%arg0: i32, %arg1: i32) -> (i32, i32) {
    %c0_i32 = arith.constant 0 : i32
    return %arg1, %arg0 : i32, i32
  }
}

</mosaic_0001>

<bundles_post_ra>
// kernel: tpu_custom_call.1
= control target key start
LH: loop header
LB: loop body
LE: loop exit
PB: predicated region body
PF: predicated region fallthrough
CT: control target
= control target key end

     0   :  { %8 = vsyncpa [#allocation4], 0  ;;  %s822_s0 = inlined_call_operand.vmem [shape: f32[8,128], index: 0, kind: input, shape index: {}]   ;;  %s823_s1 = inlined_call_operand.hbm [shape: f32[128,128], index: 1, kind: input, shape index: {}]   ;;  %s824_s2 = inlined_call_operand.vmem [shape: s32[8,1], index: 2, kind: input, shape index: {}]   ;;  %s825_s3 = inlined_call_operand.hbm [shape: f32[8,128], index: 3, kind: output, shape index: {}]  }
   0x1   :  { %9 = vsyncpa [#allocation5], 0  ;;  %s16_s14 = sshll.u32 %s823_s1, 4  ;;  %s492_s15 = smov [#allocation3]   ;;  %s17_s14 = int_to_ptr.hbm [resolvable:$true] %s16_s14 }
   0x2   :  { %s18_s16 = sshll.u32 %s492_s15, 4  ;;  %s493_s17 = smov 128   ;;  %s19_s16 = int_to_ptr.vmem [resolvable:$true] %s18_s16 }
   0x3   :  { %s494_s18 = smov 8  }
   0x4   :  { %24 = dma.hbm_to_vmem [thread:$0]  %s17_s14, 2048, %s19_s16, [#allocation4], %s493_s17, %s493_s17, %s494_s18  }
   0x5   :  { %488 = dma.done.wait [#allocation4], 2048  }
   0x6   :  { %489 = vsyncadd [#allocation4], 4294965248  ;;  %v520_v0 = vld [vmem:[#allocation3 + $0x78] sm:$0xff]  ;;  %v522_v1 = vld [vmem:[#allocation3 + $0x68] sm:$0xff]  ;;  %s388_s24 = sshll.u32 %s825_s3, 4  ;;  %s389_s24 = int_to_ptr.hbm [resolvable:$true] %s388_s24 }
   0x7   :  { %v524_v2 = vld [vmem:[#allocation3 + $0x58] sm:$0xff]  ;;  %v66_v3 = vmul.f32 %v520_v0, %v520_v0  ;;  %v64_v4 = vmul.f32 %v522_v1, %v522_v1  ;;  %v532_v6 = vld [vmem:[#allocation3 + $0x70] sm:$0xff]  ;;  %v534_v7 = vld [vmem:[#allocation3 + $0x60] sm:$0xff] }
   0x8   :  { %v62_v5 = vmul.f32 %v524_v2, %v524_v2  ;;  %v536_v8 = vld [vmem:[#allocation3 + $0x50] sm:$0xff]  ;;  %v65_v9 = vmul.f32 %v532_v6, %v532_v6  ;;  %v63_v10 = vmul.f32 %v534_v7, %v534_v7  ;;  %v544_v12 = vld [vmem:[#allocation3 + $0x48] sm:$0xff]  ;;  %v546_v13 = vld [vmem:[#allocation3 + $0x40] sm:$0xff] }
   0x9   :  { %97 = vadd.xlane.f32.xlu0 %v66_v3  ;;  %93 = vadd.xlane.f32.xlu1 %v64_v4  ;;  %v61_v11 = vmul.f32 %v536_v8, %v536_v8  ;;  %v548_v14 = vld [vmem:[#allocation3 + $0x38] sm:$0xff]  ;;  %v60_v15 = vmul.f32 %v544_v12, %v544_v12  ;;  %v59_v16 = vmul.f32 %v546_v13, %v546_v13  ;;  %v556_v18 = vld [vmem:[#allocation3 + $0x30] sm:$0xff]  ;;  %v558_v19 = vld [vmem:[#allocation3 + $0x28] sm:$0xff] }
   0xa   :  { %89 = vadd.xlane.f32.xlu2 %v62_v5  ;;  %v58_v17 = vmul.f32 %v548_v14, %v548_v14  ;;  %v560_v20 = vld [vmem:[#allocation3 + $0x20] sm:$0xff]  ;;  %v57_v21 = vmul.f32 %v556_v18, %v556_v18  ;;  %v56_v22 = vmul.f32 %v558_v19, %v558_v19  ;;  %v568_v24 = vld [vmem:[#allocation3 + $0x18] sm:$0xff]  ;;  %v570_v25 = vld [vmem:[#allocation3 + $0x10] sm:$0xff] }
   0xb   :  { %v55_v23 = vmul.f32 %v560_v20, %v560_v20  ;;  %v572_v26 = vld [vmem:[#allocation3 + $0x8] sm:$0xff]  ;;  %v54_v27 = vmul.f32 %v568_v24, %v568_v24  ;;  %v53_v28 = vmul.f32 %v570_v25, %v570_v25  ;;  %v580_v30 = vld [vmem:[#allocation3] sm:$0xff] }
   0xc   :  { %v52_v29 = vmul.f32 %v572_v26, %v572_v26  ;;  %v51_v31 = vmul.f32 %v580_v30, %v580_v30 }
  0x11   :  { %95 = vadd.xlane.f32.xlu0 %v65_v9  ;;  %91 = vadd.xlane.f32.xlu1 %v63_v10 }
  0x12   :  { %87 = vadd.xlane.f32.xlu2 %v61_v11 }
  0x19   :  { %85 = vadd.xlane.f32.xlu0 %v60_v15  ;;  %83 = vadd.xlane.f32.xlu1 %v59_v16 }
  0x1a   :  { %81 = vadd.xlane.f32.xlu2 %v58_v17 }
  0x21   :  { %79 = vadd.xlane.f32.xlu0 %v57_v21  ;;  %77 = vadd.xlane.f32.xlu1 %v56_v22 }
  0x22   :  { %75 = vadd.xlane.f32.xlu2 %v55_v23 }
  0x29   :  { %73 = vadd.xlane.f32.xlu0 %v54_v27  ;;  %71 = vadd.xlane.f32.xlu1 %v53_v28 }
  0x2a   :  { %69 = vadd.xlane.f32.xlu2 %v52_v29 }
  0x31   :  { %67 = vadd.xlane.f32.xlu0 %v51_v31 }
  0x7c   :  { %v98_v32 = vpop.xlane.xlu0 %97  ;;  %v94_v33 = vpop.xlane.xlu1 %93 }
  0x7d   :  { %v114_v34 = vmax.f32 %v98_v32, 1e-24  ;;  %v584_v35 = vmax.f32 %v94_v33, 1e-24  ;;  %v90_v36 = vpop.xlane.xlu2 %89 }
  0x7e   :  { %v586_v37 = vmax.f32 %v90_v36, 1e-24 }
  0x7f   :  { %406 = vrsqrt.f32 %v114_v34  ;;  %vm271_vm1 = vweird.f32 %v114_v34  ;;  %vm251_vm3 = vweird.f32 %v584_v35 }
  0x80   :  { %408 = vrsqrt.f32 %v584_v35  ;;  %vm231_vm11 = vweird.f32 %v586_v37 }
  0x81   :  { %410 = vrsqrt.f32 %v586_v37 }
  0x84   :  { %v96_v38 = vpop.xlane.xlu0 %95  ;;  %v92_v39 = vpop.xlane.xlu1 %91 }
  0x85   :  { %v407_v40 = vpop.eup %406  ;;  %v113_v41 = vmax.f32 %v96_v38, 1e-24  ;;  %v590_v42 = vmax.f32 %v92_v39, 1e-24  ;;  %v88_v43 = vpop.xlane.xlu2 %87 }
  0x86   :  { %v592_v44 = vpop.eup %408  ;;  %v266_v45 = vmul.f32 %v407_v40, %v114_v34  ;;  %v594_v46 = vmax.f32 %v88_v43, 1e-24  ;;  %vm272_vm0 = vweird.f32 %v407_v40 }
  0x87   :  { %v246_v47 = vmul.f32 %v592_v44, %v584_v35  ;;  %412 = vrsqrt.f32 %v113_v41  ;;  %v599_v49 = vpop.eup %410  ;;  %vm273_vm2 = vmor %vm271_vm1, %vm272_vm0  ;;  %vm261_vm5 = vweird.f32 %v113_v41  ;;  %vm252_vm6 = vweird.f32 %v592_v44 }
  0x88   :  { %v267_v48 = vmul.f32 %v407_v40, %v266_v45  ;;  %414 = vrsqrt.f32 %v590_v42  ;;  %v226_v52 = vmul.f32 %v599_v49, %v586_v37  ;;  %vm241_vm8 = vweird.f32 %v590_v42  ;;  %vm253_vm9 = vmor %vm251_vm3, %vm252_vm6 }
  0x89   :  { %416 = vrsqrt.f32 %v594_v46  ;;  %v247_v51 = vmul.f32 %v592_v44, %v246_v47  ;;  %vm232_vm12 = vweird.f32 %v599_v49  ;;  %vm221_vm15 = vweird.f32 %v594_v46 }
  0x8a   :  { %v268_v50 = vmul.f32 0.5, %v267_v48  ;;  %v227_v5 = vmul.f32 %v599_v49, %v226_v52  ;;  %vm667_vm14 = vmor %vm231_vm11, %vm232_vm12 }
  0x8b   :  { %v248_v61 = vmul.f32 0.5, %v247_v51 }
  0x8c   :  { %v86_v53 = vpop.xlane.xlu0 %85  ;;  %v84_v54 = vpop.xlane.xlu1 %83  ;;  %v269_v55 = vsub.f32 1.5, %v268_v50  ;;  %v228_v27 = vmul.f32 0.5, %v227_v5 }
  0x8d   :  { %v413_v56 = vpop.eup %412  ;;  %v605_v57 = vmax.f32 %v86_v53, 1e-24  ;;  %v607_v58 = vmax.f32 %v84_v54, 1e-24  ;;  %v82_v59 = vpop.xlane.xlu2 %81  ;;  %v249_v17 = vsub.f32 1.5, %v248_v61 }
  0x8e   :  { %v609_v60 = vpop.eup %414  ;;  %v256_v62 = vmul.f32 %v413_v56, %v113_v41  ;;  %v270_v63 = vmul.f32 %v407_v40, %v269_v55  ;;  %v617_v10 = vmax.f32 %v82_v59, 1e-24  ;;  %vm262_vm4 = vweird.f32 %v413_v56 }
  0x8f   :  { %v611_v3 = vpop.eup %416  ;;  %v236_v4 = vmul.f32 %v609_v60, %v590_v42  ;;  %418 = vrsqrt.f32 %v605_v57  ;;  %v250_v39 = vmul.f32 %v592_v44, %v249_v17  ;;  %vm263_vm7 = vmor %vm261_vm5, %vm262_vm4  ;;  %v229_v43 = vsub.f32 1.5, %v228_v27 }
  0x90   :  { %v257_v9 = vmul.f32 %v413_v56, %v256_v62  ;;  %v216_v15 = vmul.f32 %v611_v3, %v594_v46  ;;  %420 = vrsqrt.f32 %v607_v58  ;;  %v274_v16 = vsel %vm273_vm2, %v407_v40, %v270_v63 }
  0x91   :  { %v237_v11 = vmul.f32 %v609_v60, %v236_v4  ;;  %v290_v22 = vmul.f32 %v274_v16, %v520_v0  ;;  %422 = vrsqrt.f32 %v617_v10  ;;  %vm242_vm10 = vweird.f32 %v609_v60 }
  0x92   :  { %v258_v21 = vmul.f32 0.5, %v257_v9  ;;  %v217_v32 = vmul.f32 %v611_v3, %v216_v15  ;;  %v254_v54 = vsel %vm253_vm9, %v592_v44, %v250_v39  ;;  %vm243_vm13 = vmor %vm241_vm8, %vm242_vm10  ;;  %v230_v44 = vmul.f32 %v599_v49, %v229_v43 }
  0x93   :  { %v238_v23 = vmul.f32 0.5, %v237_v11  ;;  %324 = vmatpush.xpose.msra.mxu0 %v290_v22  ;;  %vm222_vm0 = vweird.f32 %v611_v3  ;;  %vm211_vm2 = vweird.f32 %v605_v57  ;;  %vm201_vm4 = vweird.f32 %v607_v58 }
  0x94   :  { %v259_v28 = vsub.f32 1.5, %v258_v21  ;;  %v80_v29 = vpop.xlane.xlu0 %79  ;;  %v78_v34 = vpop.xlane.xlu1 %77  ;;  %v218_v47 = vmul.f32 0.5, %v217_v32  ;;  %vm688_vm1 = vmor %vm221_vm15, %vm222_vm0  ;;  %vm191_vm8 = vweird.f32 %v617_v10 }
  0x95   :  { %v626_v31 = vpop.eup %418  ;;  %v629_v33 = vmax.f32 %v80_v29, 1e-24  ;;  %v239_v0 = vsub.f32 1.5, %v238_v23  ;;  %v638_v41 = vmax.f32 %v78_v34, 1e-24  ;;  %v76_v50 = vpop.xlane.xlu2 %75 }
  0x96   :  { %v206_v36 = vmul.f32 %v626_v31, %v605_v57  ;;  %v260_v38 = vmul.f32 %v413_v56, %v259_v28  ;;  %v635_v40 = vpop.eup %420  ;;  %v219_v59 = vsub.f32 1.5, %v218_v47  ;;  %vm212_vm3 = vweird.f32 %v626_v31 }
  0x97   :  { %424 = vrsqrt.f32 %v629_v33  ;;  %v647_v51 = vpop.eup %422  ;;  %v196_v53 = vmul.f32 %v635_v40, %v607_v58  ;;  %v240_v55 = vmul.f32 %v609_v60, %v239_v0  ;;  %vm202_vm5 = vweird.f32 %v635_v40  ;;  %vm213_vm6 = vmor %vm211_vm2, %vm212_vm3 }
  0x98   :  { %v264_v45 = vsel %vm263_vm7, %v413_v56, %v260_v38  ;;  %v207_v52 = vmul.f32 %v626_v31, %v206_v36  ;;  %426 = vrsqrt.f32 %v638_v41  ;;  %v186_v35 = vmul.f32 %v647_v51, %v617_v10  ;;  %vm726_vm7 = vmor %vm201_vm4, %vm202_vm5 }
  0x99   :  { %v289_v48 = vmul.f32 %v264_v45, %v532_v6  ;;  %v657_v6 = vmax.f32 %v76_v50, 1e-24  ;;  %v288_v56 = vmul.f32 %v254_v54, %v522_v1  ;;  %v197_v37 = vmul.f32 %v635_v40, %v196_v53 }
  0x9a   :  { %v208_v61 = vmul.f32 0.5, %v207_v52  ;;  %v244_v63 = vsel %vm243_vm13, %v609_v60, %v240_v55  ;;  %v187_v1 = vmul.f32 %v647_v51, %v186_v35  ;;  %v234_v60 = vsel %vm667_vm14, %v599_v49, %v230_v44 }
  0x9b   :  { %325 = vmatpush.xpose.msra.mxu0 %v289_v48  ;;  %428 = vrsqrt.f32 %v657_v6  ;;  %v287_v9 = vmul.f32 %v244_v63, %v534_v7  ;;  %v198_v16 = vmul.f32 0.5, %v197_v37  ;;  %v220_v21 = vmul.f32 %v611_v3, %v219_v59 }
  0x9c   :  { %v74_v62 = vpop.xlane.xlu0 %73  ;;  %v209_v15 = vsub.f32 1.5, %v208_v61  ;;  %v72_v17 = vpop.xlane.xlu1 %71  ;;  %v286_v7 = vmul.f32 %v234_v60, %v524_v2  ;;  %v188_v49 = vmul.f32 0.5, %v187_v1  ;;  %vm192_vm9 = vweird.f32 %v647_v51 }
  0x9d   :  { %v671_v5 = vpop.eup %424  ;;  %v677_v42 = vmax.f32 %v74_v62, 1e-24  ;;  %v698_v27 = vmax.f32 %v72_v17, 1e-24  ;;  %v70_v28 = vpop.xlane.xlu2 %69  ;;  %v199_v32 = vsub.f32 1.5, %v198_v16  ;;  %v224_v2 = vsel %vm688_vm1, %v611_v3, %v220_v21  ;;  %vm745_vm10 = vmor %vm191_vm8, %vm192_vm9 }
  0x9e   :  { %v683_v11 = vpop.eup %426  ;;  %v176_v46 = vmul.f32 %v671_v5, %v629_v33  ;;  %v210_v0 = vmul.f32 %v626_v31, %v209_v15  ;;  %v708_v36 = vmax.f32 %v70_v28, 1e-24  ;;  %v285_v43 = vmul.f32 %v224_v2, %v536_v8 }
  0x9f   :  { %326 = vmatpush.xpose.msra.mxu0 %v288_v56  ;;  %v166_v23 = vmul.f32 %v683_v11, %v638_v41  ;;  %430 = vrsqrt.f32 %v677_v42  ;;  %v189_v3 = vsub.f32 1.5, %v188_v49  ;;  %v200_v50 = vmul.f32 %v635_v40, %v199_v32 }
  0xa0   :  { %v177_v34 = vmul.f32 %v671_v5, %v176_v46  ;;  %432 = vrsqrt.f32 %v698_v27  ;;  %v214_v48 = vsel %vm213_vm6, %v626_v31, %v210_v0  ;;  %vm181_vm11 = vweird.f32 %v629_v33 }
  0xa1   :  { %v700_v29 = vpop.eup %428  ;;  %v167_v38 = vmul.f32 %v683_v11, %v166_v23  ;;  %434 = vrsqrt.f32 %v708_v36  ;;  %v284_v54 = vmul.f32 %v214_v48, %v544_v12  ;;  %v204_v35 = vsel %vm726_vm7, %v635_v40, %v200_v50  ;;  %v307_v50 = vld [vmem:[%s822_s0] sm:$0xff]  ;;  %s496_s0 = smov [#allocation6]  }
  0xa2   :  { %v156_v39 = vmul.f32 %v700_v29, %v657_v6  ;;  %v178_v45 = vmul.f32 0.5, %v177_v34  ;;  %v190_v10 = vmul.f32 %v647_v51, %v189_v3  ;;  %vm182_vm12 = vweird.f32 %v671_v5  ;;  %s386_s21 = sshll.u32 %s496_s0, 4  ;;  %s387_s21 = int_to_ptr.vmem [resolvable:$true] %s386_s21 }
  0xa3   :  { %327 = vmatpush.xpose.msra.mxu0 %v287_v9  ;;  %v168_v8 = vmul.f32 0.5, %v167_v38  ;;  %v283_v61 = vmul.f32 %v204_v35, %v546_v13  ;;  %vm762_vm13 = vmor %vm181_vm11, %vm182_vm12  ;;  %vm171_vm14 = vweird.f32 %v638_v41  ;;  %vm172_vm15 = vweird.f32 %v683_v11  ;;  %v344_v41 = vld [vmem:[%s824_s2] sm:$0xff] }
  0xa4   :  { %v68_v47 = vpop.xlane.xlu0 %67  ;;  %v157_v57 = vmul.f32 %v700_v29, %v156_v39  ;;  %v179_v55 = vsub.f32 1.5, %v178_v45  ;;  %v194_v63 = vsel %vm745_vm10, %v647_v51, %v190_v10  ;;  %vm161_vm0 = vweird.f32 %v657_v6  ;;  %vm780_vm1 = vmor %vm171_vm14, %vm172_vm15 }
  0xa5   :  { %v722_v52 = vpop.eup %430  ;;  %v734_v31 = vmax.f32 %v68_v47, 1e-24  ;;  %v169_v12 = vsub.f32 1.5, %v168_v8  ;;  %v282_v9 = vmul.f32 %v194_v63, %v548_v14  ;;  %vm162_vm2 = vweird.f32 %v700_v29 }
  0xa6   :  { %v146_v58 = vmul.f32 %v722_v52, %v677_v42  ;;  %v743_v56 = vpop.eup %432  ;;  %v158_v59 = vmul.f32 0.5, %v157_v57  ;;  %v180_v33 = vmul.f32 %v671_v5, %v179_v55  ;;  %v495_v14 = vmov 0   ;;  %vm163_vm3 = vmor %vm161_vm0, %vm162_vm2 }
  0xa7   :  { %328 = vmatpush.xpose.msra.mxu0 %v286_v7  ;;  %436 = vrsqrt.f32 %v734_v31  ;;  %v753_v40 = vpop.eup %434  ;;  %v136_v62 = vmul.f32 %v743_v56, %v698_v27  ;;  %v170_v60 = vmul.f32 %v683_v11, %v169_v12  ;;  %404 = vset.pattern.permute.xlu1 %v495_v14  ;;  %vm151_vm4 = vweird.f32 %v677_v42 }
  0xa8   :  { %v147_v37 = vmul.f32 %v722_v52, %v146_v58  ;;  %v159_v13 = vsub.f32 1.5, %v158_v59  ;;  %v126_v1 = vmul.f32 %v753_v40, %v708_v36  ;;  %v184_v16 = vsel %vm762_vm13, %v671_v5, %v180_v33  ;;  %351 = vperm.xlu1 %404, %v344_v41   ;;  %405 = vset.pattern.permute.xlu0 %v495_v14 }
  0xa9   :  { %v137_v15 = vmul.f32 %v743_v56, %v136_v62  ;;  %v281_v21 = vmul.f32 %v184_v16, %v556_v18  ;;  %v174_v28 = vsel %vm780_vm1, %v683_v11, %v170_v60  ;;  %vm152_vm5 = vweird.f32 %v722_v52 }
  0xaa   :  { %v148_v51 = vmul.f32 0.5, %v147_v37  ;;  %v127_v5 = vmul.f32 %v753_v40, %v126_v1  ;;  %v160_v22 = vmul.f32 %v700_v29, %v159_v13  ;;  %v280_v18 = vmul.f32 %v174_v28, %v558_v19  ;;  %vm153_vm6 = vmor %vm151_vm4, %vm152_vm5 }
  0xab   :  { %329 = vmatpush.xpose.msra.mxu0 %v285_v43  ;;  %v138_v49 = vmul.f32 0.5, %v137_v15  ;;  %vm141_vm7 = vweird.f32 %v698_v27  ;;  %vm142_vm8 = vweird.f32 %v743_v56  ;;  %vm131_vm10 = vweird.f32 %v708_v36 }
  0xac   :  { %v149_v7 = vsub.f32 1.5, %v148_v51  ;;  %v164_v32 = vsel %vm163_vm3, %v700_v29, %v160_v22  ;;  %v128_v2 = vmul.f32 0.5, %v127_v5  ;;  %vm143_vm9 = vmor %vm141_vm7, %vm142_vm8  ;;  %vm132_vm11 = vweird.f32 %v753_v40 }
  0xad   :  { %v437_v46 = vpop.eup %436  ;;  %v139_v34 = vsub.f32 1.5, %v138_v49  ;;  %v279_v6 = vmul.f32 %v164_v32, %v560_v20  ;;  %vm133_vm12 = vmor %vm131_vm10, %vm132_vm11  ;;  %vm121_vm13 = vweird.f32 %v734_v31 }
  0xae   :  { %v116_v23 = vmul.f32 %v437_v46, %v734_v31  ;;  %v150_v38 = vmul.f32 %v722_v52, %v149_v7  ;;  %v129_v42 = vsub.f32 1.5, %v128_v2  ;;  %vm122_vm14 = vweird.f32 %v437_v46 }
  0xaf   :  { %330 = vmatpush.xpose.msra.mxu0 %v284_v54  ;;  %v140_v19 = vmul.f32 %v743_v56, %v139_v34  ;;  %vm123_vm15 = vmor %vm121_vm13, %vm122_vm14 }
  0xb0   :  { %v117_v0 = vmul.f32 %v437_v46, %v116_v23  ;;  %v154_v39 = vsel %vm153_vm6, %v722_v52, %v150_v38  ;;  %v130_v3 = vmul.f32 %v753_v40, %v129_v42  ;;  %v348_v52 = vlaneseq }
  0xb1   :  { %v278_v29 = vmul.f32 %v154_v39, %v568_v24  ;;  %v144_v27 = vsel %vm143_vm9, %v743_v56, %v140_v19 }
  0xb2   :  { %v118_v11 = vmul.f32 0.5, %v117_v0  ;;  %v277_v20 = vmul.f32 %v144_v27, %v570_v25  ;;  %v134_v45 = vsel %vm133_vm12, %v753_v40, %v130_v3  ;;  %v349_v53 = vand.u32 127, %v348_v52 }
  0xb3   :  { %331 = vmatpush.xpose.msra.mxu0 %v283_v61  ;;  %v276_v36 = vmul.f32 %v134_v45, %v572_v26 }
  0xb4   :  { %v119_v43 = vsub.f32 1.5, %v118_v11 }
  0xb6   :  { %v120_v47 = vmul.f32 %v437_v46, %v119_v43 }
  0xb7   :  { %332 = vmatpush.xpose.msra.mxu0 %v282_v9 }
  0xb8   :  { %v124_v24 = vsel %vm123_vm15, %v437_v46, %v120_v47 }
  0xb9   :  { %v275_v48 = vmul.f32 %v124_v24, %v580_v30 }
  0xbb   :  { %333 = vmatpush.xpose.msra.mxu0 %v281_v21 }
  0xbf   :  { %334 = vmatpush.xpose.msra.mxu0 %v280_v18 }
  0xc3   :  { %335 = vmatpush.xpose.msra.mxu0 %v279_v6 }
  0xc7   :  { %336 = vmatpush.xpose.msra.mxu0 %v278_v29 }
  0xcb   :  { %337 = vmatpush.xpose.msra.mxu0 %v277_v20 }
  0xcf   :  { %338 = vmatpush.xpose.msra.mxu0 %v276_v36 }
  0xd3   :  { %339 = vmatpush.xpose.msra.mxu0 %v275_v48 }
  0xd6   :  { %340 = vmatmul.f32.vlgmr.msra.gmra.mxu0 %v307_v50 }
 0x11a   :  { %v352_v25 = vpop.permute.xlu1 %351 }
 0x11b   :  { %vm353_vm0 = vcmp.eq.s32.totalorder %v349_v53, %v352_v25 }
 0x153   :  { %v341_v8 = vpop.f32.mrf.mxu0 }
 0x154   :  { %v354_v57 = vsel %vm353_vm0, %v341_v8, 0.0 }
 0x155   :  { %355 = vadd.xlane.f32.xlu2 %v354_v57 }
 0x1c8   :  { %v356_v31 = vpop.xlane.xlu2 %355 }
 0x1c9   :  { %v357_v26 = vmul.f32 %v356_v31, %v356_v31  ;;  %v372_v37 = vmul.f32 0.87758255, %v356_v31  ;;  %v398_v33 = vadd.f32 -0.23971277, %v356_v31  ;;  %vm375_vm3 = vcmp.gt.f32.partialorder %v356_v31, -0.87758255 }
 0x1cb   :  { %v358_v54 = vsub.f32 1.0, %v357_v26 }
 0x1cd   :  { %v359_v55 = vmax.f32 %v358_v54, 0.0 }
 0x1cf   :  { %438 = vrsqrt.f32 %v359_v55  ;;  %vm367_vm1 = vcmp.eq.f32.partialorder %v359_v55, inf  ;;  %v370_v59 = vand.u32 2147483648, %v359_v55  ;;  %vm369_vm2 = vcmp.eq.f32.partialorder %v359_v55, 0.0 }
 0x1d5   :  { %v439_v30 = vpop.eup %438 }
 0x1d6   :  { %v361_v58 = vmul.f32 %v439_v30, %v359_v55 }
 0x1d8   :  { %v362_v35 = vmul.f32 %v439_v30, %v361_v58 }
 0x1da   :  { %v363_v10 = vmul.f32 0.5, %v362_v35 }
 0x1dc   :  { %v364_v56 = vsub.f32 1.5, %v363_v10 }
 0x1de   :  { %v365_v44 = vmul.f32 %v439_v30, %v364_v56 }
 0x1e0   :  { %v366_v12 = vmul.f32 %v365_v44, %v359_v55 }
 0x1e2   :  { %v368_v61 = vsel %vm367_vm1, %v359_v55, %v366_v12 }
 0x1e3   :  { %v371_v40 = vsel %vm369_vm2, %v370_v59, %v368_v61 }
 0x1e4   :  { %v373_v62 = vmul.f32 0.47942555, %v371_v40 }
 0x1e6   :  { %v374_v63 = vsub.f32 %v372_v37, %v373_v62 }
 0x1e8   :  { %v377_v4 = vsel %vm375_vm3, %v374_v63, %v398_v33 }
 0x1e9   :  { %v378_v13 = vsel %vm353_vm0, %v377_v4, %v341_v8 }
 0x1ea   :  { %v379_v1 = vmul.f32 30.0, %v378_v13 }
 0x1ec   :  { %380 = vst [vmem:[#allocation6] sm:$0xff] %v379_v1 }
 0x1ed   :  { %391 = dma.vmem_to_hbm [thread:$0]  %s387_s21, 128, %s389_s24, [#allocation5]  }
 0x1ee   :  { %490 = dma.done.wait [#allocation5], 128  }
 0x1ef   :  { %491 = vsyncadd [#allocation5], 4294967168 }
 0x1f0   :  { %396 = vsyncpa [#allocation4], 1 }
 0x1f1   :  { %397 = vsyncpa [#allocation5], 1 }

</bundles_post_ra>
